<compile_context>
chip_gen: v6e
topology: v6e:2x2x1
jax: 0.10.0
libtpu: 0.0.40
codegen_flags: <defaults>
</compile_context>

<pallas_src>
import functools

import jax
import jax.numpy as jnp
import numpy as np
from jax.experimental import pallas as pl
from jax.experimental.pallas import tpu as pltpu

EPS = 1e-5  # nn.InstanceNorm2d default eps


def _cdiv(a, b):
    return (a + b - 1) // b


def _vmem_limit_bytes():
    """Generation-aware scoped-VMEM budget (half of physical, capped)."""
    try:
        cap = int(pltpu.get_tpu_info().vmem_capacity_bytes)
    except Exception:
        cap = 64 * 1024 * 1024
    return max(32 * 1024 * 1024, min(cap // 2, 64 * 1024 * 1024))


# ------------------------------------------------------------------
# Fused path: block = (rows, full HW); per-row instance norm + affine
# ------------------------------------------------------------------
def _adain_fused_kernel(inv_hw_ref, x_ref, scale_ref, bias_ref, o_ref, *,
                        rows, resident_sb):
    if resident_sb:
        r0 = pl.multiple_of(pl.program_id(0) * rows, rows)
        sl = scale_ref[pl.ds(r0, rows), :]          # resident (R_pad,1) buffer
        bi = bias_ref[pl.ds(r0, rows), :]
    else:
        sl = scale_ref[...]                          # per-block (rows,1) sliver
        bi = bias_ref[...]
    inv = inv_hw_ref[0, 0]
    x = x_ref[...].astype(jnp.float32)               # (rows, HW)
    mean = jnp.sum(x, axis=-1, keepdims=True) * inv
    xc = x - mean                                    # two-pass variance (stable)
    var = jnp.sum(xc * xc, axis=-1, keepdims=True) * inv
    a = jax.lax.rsqrt(var + EPS) * sl                # sl = 1 + gamma
    o_ref[...] = (xc * a + bi).astype(o_ref.dtype)


# ------------------------------------------------------------------
# HW-tiled two-phase path (large HW / small-VMEM v7x)
# ------------------------------------------------------------------
def _stats_kernel(inv_hw_ref, x_ref, scale_ref, bias_ref, a_ref, b_ref,
                  sum_sc, ssq_sc, *, hw_tile, hw_total):
    j = pl.program_id(1)

    @pl.when(j == 0)
    def _():
        sum_sc[...] = jnp.zeros_like(sum_sc)
        ssq_sc[...] = jnp.zeros_like(ssq_sc)

    x = x_ref[...].astype(jnp.float32)               # (rows, hw_tile)
    if hw_total % hw_tile != 0:
        # Mask the garbage lanes of the trailing partial HW block.
        col = j * hw_tile + jax.lax.broadcasted_iota(jnp.int32, x.shape, 1)
        x = jnp.where(col < hw_total, x, 0.0)
    sum_sc[...] += jnp.sum(x, axis=-1, keepdims=True)
    ssq_sc[...] += jnp.sum(x * x, axis=-1, keepdims=True)

    @pl.when(j == pl.num_programs(1) - 1)
    def _():
        inv = inv_hw_ref[0, 0]
        mean = sum_sc[...] * inv
        # TODO(synk): shifted one-pass variance to further reduce cancellation.
        var = jnp.maximum(ssq_sc[...] * inv - mean * mean, 0.0)
        a = jax.lax.rsqrt(var + EPS) * scale_ref[...]
        a_ref[...] = a
        b_ref[...] = bias_ref[...] - mean * a


def _apply_kernel(x_ref, a_ref, b_ref, o_ref):
    x = x_ref[...].astype(jnp.float32)
    o_ref[...] = (x * a_ref[...] + b_ref[...]).astype(o_ref.dtype)


# ------------------------------------------------------------------
# Wrapper
# ------------------------------------------------------------------
def _pad_rows(v, r_pad):
    if v.shape[0] == r_pad:
        return v
    return jnp.pad(v, ((0, r_pad - v.shape[0]), (0, 0)))


def adain_apply(x2d, scale, bias, *, force_hw_tiling=False, hw_tile=None):
    """x2d: (R=B*C, HW); scale/bias: (R, 1) f32 = (1 + gamma), beta per (b,c)."""
    R, HW = x2d.shape
    dt = x2d.dtype
    itemsize = jnp.dtype(dt).itemsize
    limit = _vmem_limit_bytes()
    target = min(8 * 1024 * 1024, limit // 8)        # per-block byte target
    min_rows = max(8, 32 // itemsize)                # sublane tile (8 f32 / 16 bf16)
    bytes_per_row = HW * itemsize
    inv_hw = jnp.full((1, 1), 1.0 / HW, jnp.float32)
    smem_spec = pl.BlockSpec(memory_space=pltpu.MemorySpace.SMEM)

    # in + out double-buffered plus f32 working copies ~ 6 blocks.
    fused_fits = 6 * min_rows * bytes_per_row <= limit

    if fused_fits and not force_hw_tiling:
        # ---------------- fused single-pass path ----------------
        rows = max(min_rows, (target // bytes_per_row) // min_rows * min_rows)
        rows = min(rows, max(min_rows,
                             (limit // (6 * bytes_per_row)) // min_rows * min_rows))
        if R >= 8 * min_rows:                        # >=8 parallel steps (v7x 2 TCs)
            rows = min(rows, max(min_rows, (R // 8) // min_rows * min_rows))
        rows = min(rows, _cdiv(R, min_rows) * min_rows)
        nblk = _cdiv(R, rows)                        # trailing partial block OK:
        r_pad = nblk * rows                          # garbage rows' writes dropped.
        scale_p = _pad_rows(scale, r_pad)
        bias_p = _pad_rows(bias, r_pad)

        # scale/bias resident (one DMA) when their padded VMEM footprint is tiny.
        resident_sb = r_pad * 128 * 4 * 2 <= 2 * 1024 * 1024
        if resident_sb:
            sb_spec = pl.BlockSpec((r_pad, 1), lambda i: (0, 0))
        else:
            sb_spec = pl.BlockSpec((rows, 1), lambda i: (i, 0))

        kernel = functools.partial(_adain_fused_kernel, rows=rows,
                                   resident_sb=resident_sb)
        return pl.pallas_call(
            kernel,
            out_shape=jax.ShapeDtypeStruct((R, HW), dt),
            grid=(nblk,),
            in_specs=[smem_spec,
                      pl.BlockSpec((rows, HW), lambda i: (i, 0)),
                      sb_spec, sb_spec],
            out_specs=pl.BlockSpec((rows, HW), lambda i: (i, 0)),
            compiler_params=pltpu.CompilerParams(
                dimension_semantics=("parallel",),
                vmem_limit_bytes=limit),
        )(inv_hw, x2d, scale_p, bias_p)

    # ---------------- HW-tiled two-phase path ----------------
    rows = min_rows
    nblk_r = _cdiv(R, rows)
    r_pad = nblk_r * rows
    scale_p = _pad_rows(scale, r_pad)
    bias_p = _pad_rows(bias, r_pad)
    if hw_tile is None:
        hw_tile = (target // (rows * itemsize)) // 128 * 128
        hw_tile = max(128, min(hw_tile, _cdiv(HW, 128) * 128))
    nblk_hw = _cdiv(HW, hw_tile)

    # TODO(synk): sweep pipeline_mode=pl.Buffered(3) on the x input for v7x.
    stats = functools.partial(_stats_kernel, hw_tile=hw_tile, hw_total=HW)
    a, b = pl.pallas_call(
        stats,
        out_shape=(jax.ShapeDtypeStruct((r_pad, 1), jnp.float32),
                   jax.ShapeDtypeStruct((r_pad, 1), jnp.float32)),
        grid=(nblk_r, nblk_hw),
        in_specs=[smem_spec,
                  pl.BlockSpec((rows, hw_tile), lambda i, j: (i, j)),
                  pl.BlockSpec((rows, 1), lambda i, j: (i, 0)),
                  pl.BlockSpec((rows, 1), lambda i, j: (i, 0))],
        out_specs=(pl.BlockSpec((rows, 1), lambda i, j: (i, 0)),
                   pl.BlockSpec((rows, 1), lambda i, j: (i, 0))),
        scratch_shapes=[pltpu.VMEM((rows, 1), jnp.float32),
                        pltpu.VMEM((rows, 1), jnp.float32)],
        compiler_params=pltpu.CompilerParams(
            dimension_semantics=("parallel", "arbitrary"),
            vmem_limit_bytes=limit),
    )(inv_hw, x2d, scale_p, bias_p)

    return pl.pallas_call(
        _apply_kernel,
        out_shape=jax.ShapeDtypeStruct((R, HW), dt),
        grid=(nblk_r, nblk_hw),
        in_specs=[pl.BlockSpec((rows, hw_tile), lambda i, j: (i, j)),
                  pl.BlockSpec((rows, 1), lambda i, j: (i, 0)),
                  pl.BlockSpec((rows, 1), lambda i, j: (i, 0))],
        out_specs=pl.BlockSpec((rows, hw_tile), lambda i, j: (i, j)),
        compiler_params=pltpu.CompilerParams(
            dimension_semantics=("parallel", "parallel"),
            vmem_limit_bytes=limit),
    )(x2d, a, b)


# ------------------------------------------------------------------
# Full forward (matches AdaINLayer.forward)
# ------------------------------------------------------------------
def adain_forward(x, modulation_input, params, **apply_kwargs):
    B, C, H, W = x.shape
    z = modulation_input.reshape(B, -1)                       # view(B, -1)
    # Modulation MLP left to plain jnp (per perf review): two tiny matmuls
    # that XLA fuses; removes a kernel launch and the scale/bias round trip.
    actv = jnp.maximum(z @ params["w1"] + params["b1"], 0.0)
    scale = 1.0 + (actv @ params["wg"] + params["bg"])        # (B, C) = 1 + gamma
    beta = actv @ params["wb"] + params["bb"]                 # (B, C)
    x2d = x.reshape(B * C, H * W)
    out2d = adain_apply(
        x2d,
        scale.reshape(B * C, 1).astype(jnp.float32),
        beta.reshape(B * C, 1).astype(jnp.float32),
        **apply_kwargs)
    return out2d.reshape(B, C, H, W)


def init_params(key, input_nc, modulation_nc, nhidden=128):
    # PyTorch Linear default init: U(-1/sqrt(fan_in), +1/sqrt(fan_in))
    ks = jax.random.split(key, 6)

    def lin(kw, kb, fan_in, fan_out):
        bound = 1.0 / np.sqrt(fan_in)
        w = jax.random.uniform(kw, (fan_in, fan_out), jnp.float32, -bound, bound)
        b = jax.random.uniform(kb, (fan_out,), jnp.float32, -bound, bound)
        return w, b

    w1, b1 = lin(ks[0], ks[1], modulation_nc, nhidden)
    wg, bg = lin(ks[2], ks[3], nhidden, input_nc)
    wb, bb = lin(ks[4], ks[5], nhidden, input_nc)
    return {"w1": w1, "b1": b1, "wg": wg, "bg": bg, "wb": wb, "bb": bb}


def adain_reference(x, modulation_input, params):
    B, C, H, W = x.shape
    z = modulation_input.reshape(B, -1)
    actv = jnp.maximum(z @ params["w1"] + params["b1"], 0.0)
    gamma = actv @ params["wg"] + params["bg"]
    beta = actv @ params["wb"] + params["bb"]
    mean = jnp.mean(x, axis=(2, 3), keepdims=True)
    var = jnp.mean((x - mean) ** 2, axis=(2, 3), keepdims=True)
    normalized = (x - mean) * jax.lax.rsqrt(var + EPS)
    return normalized * (1.0 + gamma[:, :, None, None]) + beta[:, :, None, None]


if __name__ == "__main__":
    key = jax.random.PRNGKey(0)

    def run_case(B, C, H, W, mod_nc, **kw):
        ks = jax.random.split(jax.random.fold_in(key, B * 1000 + C * 100 + H), 3)
        x = jax.random.normal(ks[0], (B, C, H, W), jnp.float32)
        mod = jax.random.normal(ks[1], (B, mod_nc), jnp.float32)
        params = init_params(ks[2], C, mod_nc)
        out = jax.block_until_ready(adain_forward(x, mod, params, **kw))
        ref = adain_reference(x, mod, params)
        np.testing.assert_allclose(np.asarray(out), np.asarray(ref),
                                   rtol=1e-4, atol=1e-4)

    # Fused path, HW a multiple of 128.
    run_case(2, 4, 16, 16, 32)
    # Fused path, HW not a multiple of 128 and R not a multiple of 8
    # (partial trailing blocks, no wrapper pad/slice).
    run_case(2, 3, 14, 14, 32)
    # HW-tiled two-phase path (forced, small tile to exercise masking).
    run_case(2, 4, 32, 24, 32, force_hw_tiling=True, hw_tile=512)

    print("KERNEL_OK")
</pallas_src>

<mosaic_0001>
module attributes {stable_mosaic.version = 11 : i64} {
  func.func @_adain_fused_kernel(%arg0: i32, %arg1: memref<1x1xf32, #tpu.memory_space<smem>>, %arg2: memref<8x256xf32, #tpu.memory_space<vmem>>, %arg3: memref<8x1xf32, #tpu.memory_space<vmem>>, %arg4: memref<8x1xf32, #tpu.memory_space<vmem>>, %arg5: memref<8x256xf32, #tpu.memory_space<vmem>>) attributes {dimension_semantics = [#tpu.dimension_semantics<parallel>], iteration_bounds = array<i64: 1>, scalar_prefetch = 0 : i64, scratch_operands = 0 : i64, tpu.core_type = #tpu.core_type<tc>, window_params = [{transform_indices = @transform_0, window_bounds = array<i64: 1, 1>}, {transform_indices = @transform_1, window_bounds = array<i64: 8, 256>}, {pipeline_mode = #tpu.pipeline_mode<synchronous>, transform_indices = @transform_2, window_bounds = array<i64: 8, 1>}, {pipeline_mode = #tpu.pipeline_mode<synchronous>, transform_indices = @transform_3, window_bounds = array<i64: 8, 1>}, {transform_indices = @transform_4, window_bounds = array<i64: 8, 256>}]} {
    %c8_i32 = arith.constant 8 : i32
    %0 = arith.muli %arg0, %c8_i32 : i32
    %1 = tpu.assume_multiple %0, 8 : i32
    %2 = arith.index_cast %1 : i32 to index
    %c0 = arith.constant 0 : index
    %3 = vector.load %arg3[%2, %c0] : memref<8x1xf32, #tpu.memory_space<vmem>>, vector<8x1xf32>
    %4 = arith.index_cast %1 : i32 to index
    %c0_0 = arith.constant 0 : index
    %5 = vector.load %arg4[%4, %c0_0] : memref<8x1xf32, #tpu.memory_space<vmem>>, vector<8x1xf32>
    %c0_1 = arith.constant 0 : index
    %c0_2 = arith.constant 0 : index
    %6 = memref.load %arg1[%c0_1, %c0_2] : memref<1x1xf32, #tpu.memory_space<smem>>
    %c0_3 = arith.constant 0 : index
    %c0_4 = arith.constant 0 : index
    %7 = vector.load %arg2[%c0_3, %c0_4] : memref<8x256xf32, #tpu.memory_space<vmem>>, vector<8x256xf32>
    %cst = arith.constant dense<0.000000e+00> : vector<8xf32>
    %8 = vector.multi_reduction <add>, %7, %cst [1] : vector<8x256xf32> to vector<8xf32>
    %9 = vector.shape_cast %8 : vector<8xf32> to vector<8x1xf32>
    %10 = vector.broadcast %6 : f32 to vector<8x1xf32>
    %11 = arith.mulf %9, %10 : vector<8x1xf32>
    %12 = vector.broadcast %11 : vector<8x1xf32> to vector<8x256xf32>
    %13 = arith.subf %7, %12 : vector<8x256xf32>
    %14 = arith.mulf %13, %13 : vector<8x256xf32>
    %cst_5 = arith.constant dense<0.000000e+00> : vector<8xf32>
    %15 = vector.multi_reduction <add>, %14, %cst_5 [1] : vector<8x256xf32> to vector<8xf32>
    %16 = vector.shape_cast %15 : vector<8xf32> to vector<8x1xf32>
    %17 = vector.broadcast %6 : f32 to vector<8x1xf32>
    %18 = arith.mulf %16, %17 : vector<8x1xf32>
    %cst_6 = arith.constant 9.99999974E-6 : f32
    %19 = vector.broadcast %cst_6 : f32 to vector<8x1xf32>
    %20 = arith.addf %18, %19 : vector<8x1xf32>
    %21 = math.rsqrt %20 : vector<8x1xf32>
    %22 = arith.mulf %21, %3 : vector<8x1xf32>
    %23 = vector.broadcast %22 : vector<8x1xf32> to vector<8x256xf32>
    %24 = arith.mulf %13, %23 : vector<8x256xf32>
    %25 = vector.broadcast %5 : vector<8x1xf32> to vector<8x256xf32>
    %26 = arith.addf %24, %25 : vector<8x256xf32>
    %c0_7 = arith.constant 0 : index
    %c0_8 = arith.constant 0 : index
    %27 = vector.load %arg5[%c0_7, %c0_8] : memref<8x256xf32, #tpu.memory_space<vmem>>, vector<8x256xf32>
    tpu.vector_store %arg5[%c0_7, %c0_8], %26 {strides = array<i32>} : memref<8x256xf32, #tpu.memory_space<vmem>>, vector<8x256xf32>,
    return
  }
  func.func @transform_0(%arg0: i32) -> (i32, i32) {
    %c0_i32 = arith.constant 0 : i32
    %c0_i32_0 = arith.constant 0 : i32
    %c0_i32_1 = arith.constant 0 : i32
    return %c0_i32, %c0_i32_0 : i32, i32
  }
  func.func @transform_1(%arg0: i32) -> (i32, i32) {
    %c0_i32 = arith.constant 0 : i32
    %c0_i32_0 = arith.constant 0 : i32
    return %arg0, %c0_i32 : i32, i32
  }
  func.func @transform_2(%arg0: i32) -> (i32, i32) {
    %c0_i32 = arith.constant 0 : i32
    %c0_i32_0 = arith.constant 0 : i32
    %c0_i32_1 = arith.constant 0 : i32
    return %c0_i32, %c0_i32_0 : i32, i32
  }
  func.func @transform_3(%arg0: i32) -> (i32, i32) {
    %c0_i32 = arith.constant 0 : i32
    %c0_i32_0 = arith.constant 0 : i32
    %c0_i32_1 = arith.constant 0 : i32
    return %c0_i32, %c0_i32_0 : i32, i32
  }
  func.func @transform_4(%arg0: i32) -> (i32, i32) {
    %c0_i32 = arith.constant 0 : i32
    %c0_i32_0 = arith.constant 0 : i32
    return %arg0, %c0_i32 : i32, i32
  }
}

</mosaic_0001>

<bundles_post_ra>
// kernel: tpu_custom_call.1
= control target key start
LH: loop header
LB: loop body
LE: loop exit
PB: predicated region body
PF: predicated region fallthrough
CT: control target
= control target key end

     0   :  { %s146_s0 = inlined_call_operand.<no memory space> [shape: f32[1,1], index: 0, kind: input, shape index: {}]   ;;  %s147_s1 = inlined_call_operand.vmem [shape: f32[8,256], index: 1, kind: input, shape index: {}]   ;;  %s148_s2 = inlined_call_operand.vmem [shape: f32[8,1], index: 2, kind: input, shape index: {}]   ;;  %s149_s3 = inlined_call_operand.vmem [shape: f32[8,1], index: 3, kind: input, shape index: {}]   ;;  %s150_s4 = inlined_call_operand.hbm [shape: f32[8,256], index: 4, kind: output, shape index: {}]  }
   0x1   :  { %v25_v0 = vld [vmem:[%s147_s1] sm:$0xff]  ;;  %v26_v1 = vld [vmem:[%s147_s1 + $0x8] sm:$0xff] }
   0x2   :  { %10 = vsyncpa [#allocation4], 0  ;;  %v27_v2 = vadd.f32 %v26_v1, %v25_v0  ;;  %v30_v3 = vstv %s146_s0  ;;  %v101_v11 = vmov 0   ;;  %v21_v15 = vld [vmem:[%s148_s2] sm:$0xff]  ;;  %s102_s23 = smov [#allocation3]  }
   0x3   :  { %75 = vset.pattern.permute.xlu1 %v101_v11  ;;  %76 = vset.pattern.permute.xlu0 %v101_v11  ;;  %v23_v18 = vld [vmem:[%s149_s3] sm:$0xff]  ;;  %s65_s24 = sshll.u32 %s102_s23, 4  ;;  %s66_s24 = int_to_ptr.vmem [resolvable:$true] %s65_s24 }
   0x4   :  { %28 = vadd.xlane.f32.xlu0 %v27_v2  ;;  %s79_s2 = scalar_lea.vmem %s66_s24, 256  ;;  %p84_p1 = scmp.lt.s32.totalorder %s66_s24, %s66_s24 }
   0x5   :  { %p80_p0 = scmp.ne.s32.totalorder %s66_s24, %s79_s2  ;;  %p85_p2 = scmp.lt.s32.totalorder %s79_s2, %s79_s2 }
   0x7   :  { %p86_p3 = por %p85_p2, %p84_p1 }
   0x9   :  { %p87_p4 = pnand %p86_p3, %p80_p0 }
  0x8d   :  { %v29_v4 = vpop.xlane.xlu0 %28 }
  0x8e   :  { %v31_v5 = vmul.f32 %v30_v3, %v29_v4 }
  0x90   :  { %v32_v6 = vsub.f32 %v25_v0, %v31_v5  ;;  %v33_v7 = vsub.f32 %v26_v1, %v31_v5 }
  0x92   :  { %v34_v8 = vmul.f32 %v32_v6, %v32_v6  ;;  %v35_v9 = vmul.f32 %v33_v7, %v33_v7 }
  0x94   :  { %v36_v10 = vadd.f32 %v35_v9, %v34_v8 }
  0x96   :  { %37 = vadd.xlane.f32.xlu0 %v36_v10 }
 0x11f   :  { %v38_v12 = vpop.xlane.xlu0 %37 }
 0x120   :  { %v39_v13 = vmul.f32 %v38_v12, %v30_v3 }
 0x122   :  { %v40_v14 = vadd.f32 1e-05, %v39_v13 }
 0x124   :  { %77 = vrsqrt.f32 %v40_v14 }
 0x131   :  { %v78_v16 = vpop.eup %77 }
 0x132   :  { %v42_v17 = vmul.f32 %v78_v16, %v21_v15 }
 0x134   :  { %45 = vperm.xlu1 %75, %v42_v17  }
 0x138   :  { %52 = vperm.xlu1 %75, %v23_v18  }
 0x1af   :  { %v46_v19 = vpop.permute.xlu1 %45 }
 0x1b0   :  { %v48_v20 = vmul.f32 %v46_v19, %v32_v6  ;;  %v49_v21 = vmul.f32 %v46_v19, %v33_v7 }
 0x1b3   :  { %v53_v22 = vpop.permute.xlu1 %52 }
 0x1b4   :  { %v55_v23 = vadd.f32 %v53_v22, %v48_v20  ;;  %v56_v24 = vadd.f32 %v53_v22, %v49_v21 }
 0x1b6   :  { %57 = vst [vmem:[#allocation3] sm:$0xff] %v55_v23  ;;  %58 = vst [vmem:[#allocation3 + $0x8] sm:$0xff] %v56_v24 }
 0x1b7   :  { %90 = shalt.err (!%p87_p4)
}
 0x1b8   :  { %68 = dma.vmem_to_hbm [thread:$0]  %s66_s24, 256, %s150_s4, [#allocation4]  }
 0x1b9   :  { %99 = dma.done.wait [#allocation4], 256  }
 0x1ba   :  { %100 = vsyncadd [#allocation4], 4294967040 }
 0x1bb   :  { %72 = vsyncpa [#allocation4], 1 }

</bundles_post_ra>
